<compile_context>
chip_gen: v7x
topology: tpu7x:2x2x1
jax: 0.10.0
libtpu: 0.0.40
codegen_flags: <defaults>
</compile_context>

<pallas_src>
import functools

import jax
import jax.numpy as jnp
from jax import lax
from jax.experimental import pallas as pl
from jax.experimental.pallas import tpu as pltpu


def _mmd_kernel(z_ref, out_ref, *, n_x, n_y, n_valid, inv_mults, pow2_chain):
    """z_ref: (N_pad, D_pad) f32, out_ref: (1, 1) f32."""
    n_pad = z_ref.shape[0]
    z = z_ref[...].astype(jnp.float32)

    # Squared Euclidean pairwise distances: ||zi||^2 + ||zj||^2 - 2 zi.zj
    sq = jnp.sum(z * z, axis=-1, keepdims=True)                       # (N, 1)
    gram = lax.dot_general(                                           # (N, N) on MXU
        z, z,
        dimension_numbers=(((1,), (1,)), ((), ())),
        preferred_element_type=jnp.float32,
    )
    l2 = jnp.maximum(sq + sq.T - 2.0 * gram, 0.0)                     # (N, N)

    # Row index used for both the pad mask and the block-mean weight vector.
    ridx = lax.broadcasted_iota(jnp.int32, (n_pad, 1), 0)             # (N, 1)

    if n_valid != n_pad:
        cidx = lax.broadcasted_iota(jnp.int32, (1, n_pad), 1)         # (1, N)
        l2 = jnp.where((ridx < n_valid) & (cidx < n_valid), l2, 0.0)

    # bandwidth = sum(L2) / (n^2 - n)  (RBF.get_bandwidth with bandwidth=None)
    bw = jnp.sum(l2) / jnp.float32(n_valid * n_valid - n_valid)
    neg_inv_bw = -1.0 / bw                                            # one scalar divide

    if pow2_chain:
        # mul_factor == 2.0: consecutive multipliers differ by exactly 2x, so
        # exp(-L2/(bw*m_k)) = u^(2^(n_kernels-1-k)) with u for the largest m.
        u = jnp.exp(l2 * (neg_inv_bw * inv_mults[-1]))                # 1 exp / element
        k_acc = u
        t = u
        for _ in range(len(inv_mults) - 1):                           # VPU squarings
            t = t * t
            k_acc = k_acc + t
    else:
        k_acc = jnp.zeros_like(l2)
        for im in inv_mults:                                          # unrolled, static
            k_acc = k_acc + jnp.exp(l2 * (neg_inv_bw * im))

    # XX - 2*XY + YY  ==  w^T K w  with w = [1/n_x]*n_x, [-1/n_y]*n_y, 0*pad
    w = jnp.where(ridx < n_x, jnp.float32(1.0 / n_x), jnp.float32(-1.0 / n_y))
    if n_valid != n_pad:
        w = jnp.where(ridx < n_valid, w, jnp.float32(0.0))
    kv = jnp.dot(k_acc, w, preferred_element_type=jnp.float32)        # (N, 1) matvec
    loss = jnp.sum(w * kv)
    out_ref[...] = jnp.reshape(loss, (1, 1))


def mmd_loss(x, y, n_kernels=8, mul_factor=2.0):
    """Pallas implementation of MMDLoss(n_kernels, mul_factor)(X, Y)."""
    n_x = int(x.shape[0])
    n_y = int(y.shape[0])
    assert n_x > 0 and n_y > 0, "MMD requires non-empty X and Y"

    z = jnp.concatenate([x, y], axis=0).astype(jnp.float32)           # vstack([X, Y])
    n, d = z.shape

    # Pad feature dim to a lane-dense multiple of 128 (zeros preserve distances).
    d_pad = pl.cdiv(d, 128) * 128
    if d_pad != d:
        z = jnp.pad(z, ((0, 0), (0, d_pad - d)))
    # Pad sample dim to a multiple of 8 sublanes; masked inside the kernel.
    n_pad = pl.cdiv(n, 8) * 8
    if n_pad != n:
        z = jnp.pad(z, ((0, n_pad - n), (0, 0)))

    # bandwidth_multipliers = mul_factor ** (arange(n_kernels) - n_kernels // 2)
    # Deterministic compile-time constants -> bake reciprocals into the kernel.
    mults = [float(mul_factor) ** (i - n_kernels // 2) for i in range(n_kernels)]
    inv_mults = tuple(1.0 / m for m in mults)
    pow2_chain = float(mul_factor) == 2.0   # exact power-of-two multiplier chain

    kernel = functools.partial(
        _mmd_kernel,
        n_x=n_x,
        n_y=n_y,
        n_valid=n,
        inv_mults=inv_mults,
        pow2_chain=pow2_chain,
    )

    # Advisory cost + VMEM sizing (l2 + K accumulator + running term + Z).
    flops = 2 * n_pad * n_pad * d_pad + 2 * n_pad * n_pad
    transcendentals = (n_pad * n_pad) if pow2_chain else (n_kernels * n_pad * n_pad)
    bytes_accessed = n_pad * d_pad * 4 + 4
    vmem_bytes = 4 * (2 * n_pad * d_pad + 4 * n_pad * n_pad) + (1 << 20)
    vmem_limit = int(min(max(vmem_bytes, 16 << 20), 64 << 20))

    out = pl.pallas_call(
        kernel,
        out_shape=jax.ShapeDtypeStruct((1, 1), jnp.float32),
        in_specs=[pl.BlockSpec((n_pad, d_pad), lambda: (0, 0))],
        out_specs=pl.BlockSpec((1, 1), lambda: (0, 0)),
        compiler_params=pltpu.CompilerParams(vmem_limit_bytes=vmem_limit),
        cost_estimate=pl.CostEstimate(
            flops=flops,
            transcendentals=transcendentals,
            bytes_accessed=bytes_accessed,
        ),
    )(z)
    return out[0, 0]


def _mmd_ref(x, y, n_kernels=8, mul_factor=2.0):
    """Pure-JAX reference mirroring the PyTorch module, for validation."""
    z = jnp.concatenate([x, y], axis=0).astype(jnp.float32)
    d2 = jnp.sum((z[:, None, :] - z[None, :, :]) ** 2, axis=-1)
    n = z.shape[0]
    bw = d2.sum() / (n * n - n)
    mult = jnp.float32(mul_factor) ** (
        jnp.arange(n_kernels, dtype=jnp.float32) - float(n_kernels // 2)
    )
    k = jnp.exp(-d2[None, :, :] / (bw * mult)[:, None, None]).sum(0)
    nx = x.shape[0]
    return k[:nx, :nx].mean() - 2.0 * k[:nx, nx:].mean() + k[nx:, nx:].mean()


if __name__ == "__main__":
    key = jax.random.PRNGKey(0)
    kx, ky = jax.random.split(key)
    # Small shapes: 8 samples each of X and Y, feature dim 32, 8 RBF kernels.
    X = jax.random.normal(kx, (8, 32), dtype=jnp.float32)
    Y = jax.random.normal(ky, (8, 32), dtype=jnp.float32) + 0.5

    # Default power-of-two multiplier path (one exp + repeated squaring).
    loss = mmd_loss(X, Y, n_kernels=8, mul_factor=2.0)
    jax.block_until_ready(loss)
    ref = _mmd_ref(X, Y, n_kernels=8, mul_factor=2.0)
    assert jnp.allclose(loss, ref, rtol=2e-4, atol=2e-5), (loss, ref)

    # General multiplier path (unrolled exp accumulation).
    loss_g = mmd_loss(X, Y, n_kernels=5, mul_factor=3.0)
    jax.block_until_ready(loss_g)
    ref_g = _mmd_ref(X, Y, n_kernels=5, mul_factor=3.0)
    assert jnp.allclose(loss_g, ref_g, rtol=2e-4, atol=2e-5), (loss_g, ref_g)

    print("KERNEL_OK")
</pallas_src>

<mosaic_0001>
module attributes {stable_mosaic.version = 11 : i64} {
  func.func @_mmd_kernel(%arg0: memref<16x128xf32, #tpu.memory_space<vmem>>, %arg1: memref<1x1xf32, #tpu.memory_space<vmem>>) attributes {dimension_semantics = [], scalar_prefetch = 0 : i64, scratch_operands = 0 : i64, tpu.core_type = #tpu.core_type<tc>} {
    %c0 = arith.constant 0 : index
    %c0_0 = arith.constant 0 : index
    %0 = vector.load %arg0[%c0, %c0_0] : memref<16x128xf32, #tpu.memory_space<vmem>>, vector<16x128xf32>
    %1 = arith.mulf %0, %0 : vector<16x128xf32>
    %cst = arith.constant dense<0.000000e+00> : vector<16xf32>
    %2 = vector.multi_reduction <add>, %1, %cst [1] : vector<16x128xf32> to vector<16xf32>
    %3 = vector.shape_cast %2 : vector<16xf32> to vector<16x1xf32>
    %cst_1 = arith.constant dense<0.000000e+00> : vector<16x16xf32>
    %4 = tpu.matmul %0, %0, %cst_1 {dimension_numbers = #tpu.dot_dimension_numbers<[1], [1], [0], [0], [0, 0, 1, 0], [], []>} : vector<16x128xf32>, vector<16x128xf32>, vector<16x16xf32> -> vector<16x16xf32>
    %5 = tpu.transpose %3, [1, 0] : vector<16x1xf32> -> vector<1x16xf32>
    %6 = vector.broadcast %3 : vector<16x1xf32> to vector<16x16xf32>
    %7 = vector.broadcast %5 : vector<1x16xf32> to vector<16x16xf32>
    %8 = arith.addf %6, %7 : vector<16x16xf32>
    %cst_2 = arith.constant 2.000000e+00 : f32
    %9 = vector.broadcast %cst_2 : f32 to vector<16x16xf32>
    %10 = arith.mulf %9, %4 : vector<16x16xf32>
    %11 = arith.subf %8, %10 : vector<16x16xf32>
    %cst_3 = arith.constant 0.000000e+00 : f32
    %12 = vector.broadcast %cst_3 : f32 to vector<16x16xf32>
    %13 = arith.maximumf %11, %12 : vector<16x16xf32>
    %14 = tpu.iota {dimensions = array<i32: 0>} : vector<16x1xi32>
    %15 = vector.shape_cast %13 : vector<16x16xf32> to vector<1x16x16xf32>
    %cst_4 = arith.constant dense<0.000000e+00> : vector<1xf32>
    %16 = vector.multi_reduction <add>, %15, %cst_4 [1, 2] : vector<1x16x16xf32> to vector<1xf32>
    %17 = vector.shape_cast %16 : vector<1xf32> to vector<1x1x1xf32>
    %18 = vector.extract %17[0, 0, 0] : f32 from vector<1x1x1xf32>
    %cst_5 = arith.constant 2.400000e+02 : f32
    %19 = arith.divf %18, %cst_5 : f32
    %cst_6 = arith.constant -1.000000e+00 : f32
    %20 = arith.divf %cst_6, %19 : f32
    %cst_7 = arith.constant 1.250000e-01 : f32
    %21 = arith.mulf %20, %cst_7 : f32
    %22 = vector.broadcast %21 : f32 to vector<16x16xf32>
    %23 = arith.mulf %13, %22 : vector<16x16xf32>
    %24 = math.exp %23 : vector<16x16xf32>
    %25 = arith.mulf %24, %24 : vector<16x16xf32>
    %26 = arith.addf %24, %25 : vector<16x16xf32>
    %27 = arith.mulf %25, %25 : vector<16x16xf32>
    %28 = arith.addf %26, %27 : vector<16x16xf32>
    %29 = arith.mulf %27, %27 : vector<16x16xf32>
    %30 = arith.addf %28, %29 : vector<16x16xf32>
    %31 = arith.mulf %29, %29 : vector<16x16xf32>
    %32 = arith.addf %30, %31 : vector<16x16xf32>
    %33 = arith.mulf %31, %31 : vector<16x16xf32>
    %34 = arith.addf %32, %33 : vector<16x16xf32>
    %35 = arith.mulf %33, %33 : vector<16x16xf32>
    %36 = arith.addf %34, %35 : vector<16x16xf32>
    %37 = arith.mulf %35, %35 : vector<16x16xf32>
    %38 = arith.addf %36, %37 : vector<16x16xf32>
    %c8_i32 = arith.constant 8 : i32
    %39 = vector.broadcast %c8_i32 : i32 to vector<16x1xi32>
    %40 = arith.cmpi slt, %14, %39 : vector<16x1xi32>
    %cst_8 = arith.constant 1.250000e-01 : f32
    %cst_9 = arith.constant -1.250000e-01 : f32
    %41 = vector.broadcast %cst_8 : f32 to vector<16x1xf32>
    %42 = vector.broadcast %cst_9 : f32 to vector<16x1xf32>
    %43 = arith.select %40, %41, %42 : vector<16x1xi1>, vector<16x1xf32>
    %cst_10 = arith.constant dense<0.000000e+00> : vector<16x1xf32>
    %44 = tpu.matmul %38, %43, %cst_10 {dimension_numbers = #tpu.dot_dimension_numbers<[1], [0], [0], [1], [0, 0, 1, 1], [], []>} : vector<16x16xf32>, vector<16x1xf32>, vector<16x1xf32> -> vector<16x1xf32>
    %45 = arith.mulf %43, %44 : vector<16x1xf32>
    %46 = vector.shape_cast %45 : vector<16x1xf32> to vector<1x16x1xf32>
    %cst_11 = arith.constant dense<0.000000e+00> : vector<1xf32>
    %47 = vector.multi_reduction <add>, %46, %cst_11 [1, 2] : vector<1x16x1xf32> to vector<1xf32>
    %48 = vector.shape_cast %47 : vector<1xf32> to vector<1x1x1xf32>
    %49 = vector.extract %48[0, 0, 0] : f32 from vector<1x1x1xf32>
    %50 = vector.broadcast %49 : f32 to vector<1x1xf32>
    %c0_12 = arith.constant 0 : index
    %c0_13 = arith.constant 0 : index
    %51 = vector.load %arg1[%c0_12, %c0_13] : memref<1x1xf32, #tpu.memory_space<vmem>>, vector<1x1xf32>
    tpu.vector_store %arg1[%c0_12, %c0_13], %50 {strides = array<i32>} : memref<1x1xf32, #tpu.memory_space<vmem>>, vector<1x1xf32>,
    return
  }
}

</mosaic_0001>

<bundles_post_ra>
// kernel: tpu_custom_call.1
= control target key start
LH: loop header
LB: loop body
LE: loop exit
PB: predicated region body
PF: predicated region fallthrough
CT: control target
= control target key end

     0   :  { %6 = vsyncpa [#allocation3], 0  ;;  %s470_s0 = inlined_call_operand.hbm [shape: f32[16,128], index: 0, kind: input, shape index: {}]   ;;  %s471_s1 = inlined_call_operand.hbm [shape: f32[1,1], index: 1, kind: output, shape index: {}]  }
   0x1   :  { %7 = vsyncpa [#allocation4], 0  ;;  %s426_s6 = smov [#allocation2]   ;;  %s378_s10 = scalar_lea.hbm %s470_s0, 256 }
   0x2   :  { %s13_s7 = sshll.u32 %s426_s6, 4  ;;  %p379_p0 = scmp.ne.s32.totalorder %s470_s0, %s378_s10  ;;  %s14_s7 = int_to_ptr.vmem [resolvable:$true] %s13_s7 }
   0x3   :  { %p382_p1 = scmp.lt.u32.totalorder %s378_s10, %s470_s0 }
   0x5   :  { %p384_p2 = pnand %p382_p1, %p379_p0 }
   0x7   :  { %387 = shalt.err (!%p384_p2)
}
   0x8   :  { %s388_s15 = scalar_lea.vmem %s14_s7, 256  ;;  %p393_p4 = scmp.lt.s32.totalorder %s14_s7, %s14_s7 }
   0x9   :  { %p389_p3 = scmp.ne.s32.totalorder %s14_s7, %s388_s15  ;;  %p394_p5 = scmp.lt.s32.totalorder %s388_s15, %s388_s15 }
   0xb   :  { %p395_p6 = por %p394_p5, %p393_p4 }
   0xd   :  { %p396_p7 = pnand %p395_p6, %p389_p3 }
   0xf   :  { %399 = shalt.err (!%p396_p7)
}
  0x10   :  { %s427_s16 = smov 128   ;;  %s428_s17 = smov 8  }
  0x11   :  { %19 = dma.hbm_to_vmem [thread:$0]  %s470_s0, 256, %s14_s7, [#allocation3], %s427_s16, %s427_s16, %s428_s17  }
  0x12   :  { %422 = dma.done.wait [#allocation3], 256  }
  0x13   :  { %423 = vsyncadd [#allocation3], 4294967040  ;;  %v23_v0 = vld [vmem:[#allocation2] sm:$0xff]  ;;  %v24_v1 = vld [vmem:[#allocation2 + $0x8] sm:$0xff]  ;;  %v138_v9 = vlaneseq  ;;  %vm153_vm0 = vcmask 130048   ;;  %v429_v32 = vmov -0.125  }
  0x14   :  { %v25_v2 = vmul.f32 %v23_v0, %v23_v0  ;;  %v351_v3 = vpack.c.bf16 %v24_v1, %v23_v0  ;;  %341 = vmatprep.mubr.f32.mxu0 %v23_v0  ;;  %v26_v4 = vmul.f32 %v24_v1, %v24_v1  ;;  %v430_v33 = vmov 0.125   ;;  %s431_s24 = smov [#allocation5]  }
  0x15   :  { %v139_v10 = vshrl.u32 %v138_v9, 7  ;;  %v355_v34 = vpack.c.bf16 %v429_v32, %v430_v33  ;;  %vm296_vm1 = vcmask 7168   ;;  %s318_s25 = sshll.u32 %s431_s24, 4  ;;  %vm310_vm2 = vcmask 0   ;;  %s319_s25 = int_to_ptr.vmem [resolvable:$true] %s318_s25 }
  0x16   :  { %27 = vadd.xlane.f32.xlu0 %v25_v2  ;;  %352 = vmatprep.subr.bf16.mxu0 %v351_v3  ;;  %s400_s27 = scalar_lea.vmem %s319_s25, 16  ;;  %s404_s28 = scalar_lea.vmem %s319_s25, 32 }
  0x17   :  { %354 = vmatpush3.bf16.xpose.msra.mxu0 %v351_v3  ;;  %v140_v11 = vsub.s32 0, %v139_v10  ;;  %356 = vmatprep.subr.bf16.mxu1 %v355_v34  ;;  %p401_p8 = scmp.ne.s32.totalorder %s319_s25, %s400_s27  ;;  %p405_p9 = scmp.lt.s32.totalorder %s319_s25, %s319_s25 }
  0x18   :  { %358 = vmatpush3.bf16.msra.mxu1 %v355_v34  ;;  %p406_p10 = scmp.lt.s32.totalorder %s404_s28, %s400_s27 }
  0x1a   :  { %29 = vadd.xlane.f32.xlu0 %v26_v4  ;;  %p407_p11 = por %p406_p10, %p405_p9 }
  0x1c   :  { %p408_p12 = pnand %p407_p11, %p401_p8 }
  0x1e   :  { %342 = vmatmul.mubr.f32.vlgmr.msra.gmra.mrb[0].mxu0 %v24_v1 }
  0xa3   :  { %v28_v5 = vpop.xlane.xlu0 %27 }
  0xa4   :  { %106 = vxpose.xlu1.b32.start [1/2] (short) (narrow) %v28_v5, 8 }
  0xa7   :  { %v30_v6 = vpop.xlane.xlu0 %29 }
  0xa8   :  { %107 = vxpose.xlu1.b32.end [2/2] (short) (narrow) %v30_v6, 8 }
  0xf1   :  { %v343_v7 = vpop.f32.mrb[0].mxu0 }
  0xf2   :  { %v97_v8 = vpop.f32.mrb[1].mxu0  ;;  %v145_v13 = vmul.f32 2.0, %v343_v7 }
  0xf3   :  { %v144_v15 = vmul.f32 2.0, %v97_v8 }
 0x124   :  { %v122_v12 = vpop.trf.xlu1 }
 0x125   :  { %v141_v14 = vrot.slane %v122_v12, %v140_v11 }
 0x127   :  { %v142_v16 = vadd.f32 %v141_v14, %v28_v5  ;;  %v143_v17 = vadd.f32 %v141_v14, %v30_v6 }
 0x129   :  { %v147_v18 = vsub.f32 %v143_v17, %v145_v13  ;;  %v146_v19 = vsub.f32 %v142_v16, %v144_v15 }
 0x12b   :  { %v148_v20 = vmax.f32 %v146_v19, 0.0  ;;  %v149_v21 = vmax.f32 %v147_v18, 0.0 }
 0x12d   :  { %v154_v22 = vsel %vm153_vm0, %v148_v20, 0.0  ;;  %v155_v23 = vsel %vm153_vm0, %v149_v21, 0.0 }
 0x12e   :  { %v156_v24 = vadd.f32 %v155_v23, %v154_v22 }
 0x130   :  { %157 = vadd.xlane.f32.xlu0 %v156_v24 }
 0x1bd   :  { %v158_v25 = vpop.xlane.xlu0 %157 }
 0x1be   :  { %v159_v26 = vrot.slane %v158_v25, 4 }
 0x1c0   :  { %v160_v27 = vadd.f32 %v159_v26, %v158_v25 }
 0x1c2   :  { %v161_v28 = vrot.slane %v160_v27, 2 }
 0x1c4   :  { %v162_v29 = vadd.f32 %v161_v28, %v160_v27 }
 0x1c6   :  { %v163_v30 = vrot.slane %v162_v29, 1 }
 0x1c8   :  { %v164_v31 = vadd.f32 %v163_v30, %v162_v29 }
 0x1ca   :  { %359 = vpush %v164_v31 }
 0x1fb   :  { %s360_s0 = spop %359 }
 0x1fc   :  { %s168_s20 = smul.f32 0.004166667, %s360_s0 }
 0x1fe   :  { %v169_v35 = vstv %s168_s20 }
 0x1ff   :  { %372 = vrcp.f32 %v169_v35 }
 0x209   :  { %v373_v36 = vpop.eup %372 }
 0x20a   :  { %361 = vpush %v373_v36 }
 0x23b   :  { %s362_s21 = spop %361 }
 0x23c   :  { %s172_s22 = smul.f32 -1.0, %s362_s21 }
 0x23e   :  { %s173_s23 = smul.f32 0.125, %s172_s22 }
 0x240   :  { %v174_v37 = vstv %s173_s23 }
 0x241   :  { %v175_v38 = vmul.f32 %v174_v37, %v148_v20  ;;  %v176_v39 = vmul.f32 %v174_v37, %v149_v21 }
 0x243   :  { %v177_v40 = vmul.f32 1.442695, %v175_v38  ;;  %v179_v41 = vmul.f32 1.442695, %v176_v39 }
 0x245   :  { %374 = vpow2.f32 %v177_v40 }
 0x246   :  { %376 = vpow2.f32 %v179_v41 }
 0x24f   :  { %v375_v42 = vpop.eup %374 }
 0x250   :  { %v377_v43 = vpop.eup %376  ;;  %v181_v44 = vmul.f32 %v375_v42, %v375_v42 }
 0x251   :  { %v182_v45 = vmul.f32 %v377_v43, %v377_v43 }
 0x252   :  { %v183_v46 = vadd.f32 %v375_v42, %v181_v44  ;;  %v185_v47 = vmul.f32 %v181_v44, %v181_v44 }
 0x253   :  { %v184_v48 = vadd.f32 %v377_v43, %v182_v45  ;;  %v186_v49 = vmul.f32 %v182_v45, %v182_v45 }
 0x254   :  { %v187_v50 = vadd.f32 %v185_v47, %v183_v46  ;;  %v189_v51 = vmul.f32 %v185_v47, %v185_v47 }
 0x255   :  { %v188_v52 = vadd.f32 %v186_v49, %v184_v48  ;;  %v190_v53 = vmul.f32 %v186_v49, %v186_v49 }
 0x256   :  { %v191_v54 = vadd.f32 %v189_v51, %v187_v50  ;;  %v193_v55 = vmul.f32 %v189_v51, %v189_v51 }
 0x257   :  { %v192_v56 = vadd.f32 %v190_v53, %v188_v52  ;;  %v194_v57 = vmul.f32 %v190_v53, %v190_v53 }
 0x258   :  { %v195_v58 = vadd.f32 %v193_v55, %v191_v54  ;;  %v197_v59 = vmul.f32 %v193_v55, %v193_v55 }
 0x259   :  { %v196_v60 = vadd.f32 %v194_v57, %v192_v56  ;;  %v198_v61 = vmul.f32 %v194_v57, %v194_v57 }
 0x25a   :  { %v199_v62 = vadd.f32 %v197_v59, %v195_v58  ;;  %v201_v63 = vmul.f32 %v197_v59, %v197_v59 }
 0x25b   :  { %v200_v0 = vadd.f32 %v198_v61, %v196_v60  ;;  %v202_v1 = vmul.f32 %v198_v61, %v198_v61 }
 0x25c   :  { %v203_v2 = vadd.f32 %v201_v63, %v199_v62  ;;  %v205_v3 = vmul.f32 %v201_v63, %v201_v63 }
 0x25d   :  { %v204_v4 = vadd.f32 %v202_v1, %v200_v0  ;;  %v206_v5 = vmul.f32 %v202_v1, %v202_v1 }
 0x25e   :  { %v207_v6 = vadd.f32 %v205_v3, %v203_v2 }
 0x25f   :  { %v208_v7 = vadd.f32 %v206_v5, %v204_v4 }
 0x260   :  { %348 = vmatprep.mubr.msk.f32.mxu1 %vm153_vm0, %v207_v6 }
 0x261   :  { %349 = vmatmul.mubr.msk.f32.vlgmr.msra.gmra.mrb[0].mxu1 %vm153_vm0, %v208_v7 }
 0x334   :  { %v350_v8 = vpop.f32.mrb[0].mxu1 }
 0x335   :  { %v295_v9 = vmul.f32 -0.125, %v350_v8  ;;  %v285_v10 = vpop.f32.mrb[1].mxu1 }
 0x336   :  { %v294_v11 = vmul.f32 0.125, %v285_v10 }
 0x337   :  { %v298_v12 = vsel %vm296_vm1, %v295_v9, 0.0 }
 0x338   :  { %v297_v13 = vsel %vm296_vm1, %v294_v11, 0.0 }
 0x339   :  { %v299_v14 = vadd.f32 %v298_v12, %v297_v13 }
 0x33b   :  { %300 = vadd.xlane.f32.xlu1 %v299_v14 }
 0x3c8   :  { %v301_v15 = vpop.xlane.xlu1 %300 }
 0x3c9   :  { %v302_v16 = vrot.slane %v301_v15, 4 }
 0x3cb   :  { %v303_v17 = vadd.f32 %v302_v16, %v301_v15 }
 0x3cd   :  { %v304_v18 = vrot.slane %v303_v17, 2 }
 0x3cf   :  { %v305_v19 = vadd.f32 %v304_v18, %v303_v17 }
 0x3d1   :  { %v306_v20 = vrot.slane %v305_v19, 1 }
 0x3d3   :  { %v307_v21 = vadd.f32 %v306_v20, %v305_v19 }
 0x3d5   :  { %363 = vpush %v307_v21 }
 0x406   :  { %s364_s26 = spop %363 }
 0x407   :  { %v309_v22 = vstv %s364_s26 }
 0x408   :  { %311 = vst.msk [vmem:[#allocation5] sm:$0x1] %vm310_vm2, %v309_v22 }
 0x409   :  { %411 = shalt.err (!%p408_p12)
}
 0x40a   :  { %s412_s2 = scalar_lea.hbm %s471_s1, 16 }
 0x40b   :  { %p413_p13 = scmp.ne.s32.totalorder %s471_s1, %s412_s2  ;;  %p416_p0 = scmp.lt.u32.totalorder %s412_s2, %s471_s1 }
 0x40d   :  { %p418_p1 = pnand %p416_p0, %p413_p13 }
 0x40f   :  { %421 = shalt.err (!%p418_p1)
}
 0x410   :  { %321 = dma.vmem_to_hbm [thread:$0]  %s319_s25, 16, %s471_s1, [#allocation4]  }
 0x411   :  { %424 = dma.done.wait [#allocation4], 16  }
 0x412   :  { %425 = vsyncadd [#allocation4], 4294967280 }
 0x413   :  { %325 = vsyncpa [#allocation3], 1 }
 0x414   :  { %326 = vsyncpa [#allocation4], 1 }

</bundles_post_ra>
